<compile_context>
chip_gen: v6e
topology: v6e:2x2x1
jax: 0.10.0
libtpu: 0.0.40
codegen_flags: <defaults>
</compile_context>

<pallas_src>
import functools

import jax
import jax.numpy as jnp
from jax.experimental import pallas as pl
from jax.experimental.pallas import tpu as pltpu

COMPS = ("real", "i", "j", "k")


# ----------------------------------------------------------------------------
# Pallas kernel: single fused matmul (B,4D)@(4D,tile_e) + folded-BN bias + sigmoid
# ----------------------------------------------------------------------------
def qmult_head_kernel(x_ref, bias_ref, w_ref, o_ref):
    # x_ref:   (B, 4D)      bf16  — BN-scaled quaternion product (grid-invariant block)
    # bias_ref:(B, 1)       f32   — per-row bias from folding the entity-weight BN shift
    # w_ref:   (4D, tile_e) bf16  — raw (un-BN'd) stacked, pre-transposed entity weights
    score = jnp.dot(x_ref[...], w_ref[...], preferred_element_type=jnp.float32)
    score = score + bias_ref[...]                      # broadcast (B,1) over lanes
    o_ref[...] = jax.nn.sigmoid(score).astype(o_ref.dtype)


def _pick_tile_e(E, K, w_itemsize, desired, vmem_budget_bytes=8 * 1024 * 1024):
    """Lane-tile for the E axis: full-extent if small, else a multiple of 128 capped
    so the double-buffered weight tile stays well under the smallest scoped-VMEM default."""
    if E <= desired:
        return E                                       # full dim — always legal
    max_by_vmem = vmem_budget_bytes // (2 * K * w_itemsize)
    tile = max(128, min(desired, (max_by_vmem // 128) * 128))
    return int(tile)


def qmult_head_pallas(x_scaled, bias, w_cat, *, tile_e=1024, out_dtype=jnp.float32):
    """x_scaled: (B, 4D); bias: (B, 1) f32; w_cat: (4D, E) (bf16)."""
    B, K = x_scaled.shape
    K2, E = w_cat.shape
    assert K == K2, (K, K2)
    tile_e = _pick_tile_e(E, K, jnp.dtype(w_cat.dtype).itemsize, desired=tile_e)
    n_e = pl.cdiv(E, tile_e)

    x_spec = pl.BlockSpec((B, K), lambda e: (0, 0))        # resident across the grid
    bias_spec = pl.BlockSpec((B, 1), lambda e: (0, 0))     # resident across the grid
    w_spec = pl.BlockSpec((K, tile_e), lambda e: (0, e))   # streamed, lane-dense
    out_spec = pl.BlockSpec((B, tile_e), lambda e: (0, e))

    return pl.pallas_call(
        qmult_head_kernel,
        out_shape=jax.ShapeDtypeStruct((B, E), out_dtype),
        grid_spec=pltpu.PrefetchScalarGridSpec(
            num_scalar_prefetch=0,
            grid=(n_e,),
            in_specs=[x_spec, bias_spec, w_spec],
            out_specs=out_spec,
        ),
        compiler_params=pltpu.CompilerParams(
            dimension_semantics=("parallel",)),
    )(x_scaled, bias, w_cat)


# ----------------------------------------------------------------------------
# Parameter setup / one-time weight preparation (outside the per-call forward)
# ----------------------------------------------------------------------------
def make_params(key, num_entities, num_relations, embedding_dim):
    keys = jax.random.split(key, 8 + 32)

    def xavier(k, n, d):
        std = (2.0 / (n + d)) ** 0.5
        return std * jax.random.normal(k, (n, d), dtype=jnp.float32)

    params = {
        "emb_ent_real": xavier(keys[0], num_entities, embedding_dim),
        "emb_ent_i":    xavier(keys[1], num_entities, embedding_dim),
        "emb_ent_j":    xavier(keys[2], num_entities, embedding_dim),
        "emb_ent_k":    xavier(keys[3], num_entities, embedding_dim),
        "emb_rel_real": xavier(keys[4], num_relations, embedding_dim),
        "emb_rel_i":    xavier(keys[5], num_relations, embedding_dim),
        "emb_rel_j":    xavier(keys[6], num_relations, embedding_dim),
        "emb_rel_k":    xavier(keys[7], num_relations, embedding_dim),
    }
    # Non-trivial BatchNorm1d running stats / affine params so the BN-folding
    # path is actually exercised in the correctness check.
    ki = 8
    for name in ["bn_ent_real", "bn_ent_i", "bn_ent_j", "bn_ent_k",
                 "bn_rel_real", "bn_rel_i", "bn_rel_j", "bn_rel_k"]:
        kg, kb, km, kv = keys[ki], keys[ki + 1], keys[ki + 2], keys[ki + 3]
        ki += 4
        params[name] = {
            "gamma": 1.0 + 0.1 * jax.random.normal(kg, (embedding_dim,), jnp.float32),
            "beta": 0.1 * jax.random.normal(kb, (embedding_dim,), jnp.float32),
            "mean": 0.1 * jax.random.normal(km, (embedding_dim,), jnp.float32),
            "var": 0.5 + jax.random.uniform(kv, (embedding_dim,), jnp.float32),
        }
    return params


def batchnorm_eval(x, gamma, beta, running_mean, running_var, eps=1e-5):
    return (x - running_mean) * jax.lax.rsqrt(running_var + eps) * gamma + beta


def prepare_inference_weights(params, *, weight_dtype=jnp.bfloat16, eps=1e-5):
    """One-time prep: stack/transpose raw entity weights (4D, E) in bf16 and
    precompute the folded entity-BN scale/shift and the relation-BN affine."""
    # Raw entity table, pre-transposed and stacked along the contraction dim.
    w_cat = jnp.concatenate(
        [params[f"emb_ent_{s}"].T for s in COMPS], axis=0).astype(weight_dtype)

    ent_scale, ent_shift = [], []
    for s in COMPS:
        bn = params[f"bn_ent_{s}"]
        gs = bn["gamma"] * jax.lax.rsqrt(bn["var"] + eps)      # (D,)
        ent_scale.append(gs)
        ent_shift.append(bn["beta"] - bn["mean"] * gs)         # (D,)
    rel_scale, rel_shift = [], []
    for s in COMPS:
        bn = params[f"bn_rel_{s}"]
        gs = bn["gamma"] * jax.lax.rsqrt(bn["var"] + eps)
        rel_scale.append(gs)
        rel_shift.append(bn["beta"] - bn["mean"] * gs)

    return {
        "w_cat": w_cat,                                        # (4D, E) bf16
        "ent_scale": jnp.concatenate(ent_scale, axis=0),       # (4D,) f32
        "ent_shift": jnp.concatenate(ent_shift, axis=0),       # (4D,) f32
        "rel_scale": jnp.stack(rel_scale, axis=0),             # (4, D) f32
        "rel_shift": jnp.stack(rel_shift, axis=0),             # (4, D) f32
    }


# ----------------------------------------------------------------------------
# Jitted forward (glue: gathers, rel-BN, Hamilton product, BN fold, kernel call)
# ----------------------------------------------------------------------------
@jax.jit
def qmult_forward_head_batch(params, prep, h_idx, r_idx):
    a_h, b_h, c_h, d_h = (params[f"emb_ent_{s}"][h_idx] for s in COMPS)

    rel = []
    for i, s in enumerate(COMPS):
        e = params[f"emb_rel_{s}"][r_idx]
        rel.append(e * prep["rel_scale"][i] + prep["rel_shift"][i])   # eval-mode BN
    a_r, b_r, c_r, d_r = rel

    # Hamilton product (f32 on the VPU; bf16 only at the MXU input)
    r_val = a_h * a_r - b_h * b_r - c_h * c_r - d_h * d_r
    i_val = a_h * b_r + b_h * a_r + c_h * d_r - d_h * c_r
    j_val = a_h * c_r - b_h * d_r + c_h * a_r + d_h * b_r
    k_val = a_h * d_r + b_h * c_r - c_h * b_r + d_h * a_r
    q = jnp.concatenate([r_val, i_val, j_val, k_val], axis=-1)        # (B, 4D) f32

    # Fold entity-weight BN: scale goes onto the activations, shift becomes a
    # per-row scalar bias added inside the kernel.
    x_scaled = (q * prep["ent_scale"]).astype(prep["w_cat"].dtype)    # (B, 4D) bf16
    bias = (q @ prep["ent_shift"])[:, None].astype(jnp.float32)       # (B, 1)  f32

    return qmult_head_pallas(x_scaled, bias, prep["w_cat"])


# ----------------------------------------------------------------------------
# Pure-JAX f32 reference (mirrors the PyTorch eval-mode forward exactly)
# ----------------------------------------------------------------------------
def qmult_forward_head_batch_ref(params, h_idx, r_idx):
    a_h, b_h, c_h, d_h = (params[f"emb_ent_{s}"][h_idx] for s in COMPS)
    rel = []
    for s in COMPS:
        e = params[f"emb_rel_{s}"][r_idx]
        bn = params[f"bn_rel_{s}"]
        rel.append(batchnorm_eval(e, bn["gamma"], bn["beta"], bn["mean"], bn["var"]))
    a_r, b_r, c_r, d_r = rel
    r_val = a_h * a_r - b_h * b_r - c_h * c_r - d_h * d_r
    i_val = a_h * b_r + b_h * a_r + c_h * d_r - d_h * c_r
    j_val = a_h * c_r - b_h * d_r + c_h * a_r + d_h * b_r
    k_val = a_h * d_r + b_h * c_r - c_h * b_r + d_h * a_r
    score = 0.0
    for val, s in zip((r_val, i_val, j_val, k_val), COMPS):
        w = params[f"emb_ent_{s}"]
        bn = params[f"bn_ent_{s}"]
        w = batchnorm_eval(w, bn["gamma"], bn["beta"], bn["mean"], bn["var"])
        score = score + val @ w.T
    return jax.nn.sigmoid(score)


if __name__ == "__main__":
    NUM_ENTITIES = 128
    NUM_RELATIONS = 16
    EMBED_DIM = 32
    BATCH = 8

    key = jax.random.PRNGKey(0)
    k_params, k_h, k_r = jax.random.split(key, 3)

    params = make_params(k_params, NUM_ENTITIES, NUM_RELATIONS, EMBED_DIM)
    prep = prepare_inference_weights(params)          # one-time, outside the jitted call

    h_idx = jax.random.randint(k_h, (BATCH,), 0, NUM_ENTITIES, dtype=jnp.int32)
    r_idx = jax.random.randint(k_r, (BATCH,), 0, NUM_RELATIONS, dtype=jnp.int32)

    out = qmult_forward_head_batch(params, prep, h_idx, r_idx)
    out = jax.block_until_ready(out)

    ref = qmult_forward_head_batch_ref(params, h_idx, r_idx)
    assert out.shape == (BATCH, NUM_ENTITIES), out.shape
    # bf16 weights/activations -> looser tolerance vs. the f32 reference
    assert jnp.allclose(out, ref, atol=2e-2, rtol=2e-2), "mismatch vs JAX reference"

    print("KERNEL_OK")
</pallas_src>

<mosaic_0001>
module attributes {stable_mosaic.version = 11 : i64} {
  func.func @qmult_head_kernel(%arg0: i32, %arg1: memref<8x128xbf16, #tpu.memory_space<vmem>>, %arg2: memref<8x1xf32, #tpu.memory_space<vmem>>, %arg3: memref<128x128xbf16, #tpu.memory_space<vmem>>, %arg4: memref<8x128xf32, #tpu.memory_space<vmem>>) attributes {dimension_semantics = [#tpu.dimension_semantics<parallel>], iteration_bounds = array<i64: 1>, scalar_prefetch = 0 : i64, scratch_operands = 0 : i64, tpu.core_type = #tpu.core_type<tc>, window_params = [{pipeline_mode = #tpu.pipeline_mode<synchronous>, transform_indices = @transform_0, window_bounds = array<i64: 8, 128>}, {pipeline_mode = #tpu.pipeline_mode<synchronous>, transform_indices = @transform_1, window_bounds = array<i64: 8, 1>}, {transform_indices = @transform_2, window_bounds = array<i64: 128, 128>}, {transform_indices = @transform_3, window_bounds = array<i64: 8, 128>}]} {
    %c0 = arith.constant 0 : index
    %c0_0 = arith.constant 0 : index
    %0 = vector.load %arg1[%c0, %c0_0] : memref<8x128xbf16, #tpu.memory_space<vmem>>, vector<8x128xbf16>
    %c0_1 = arith.constant 0 : index
    %c0_2 = arith.constant 0 : index
    %1 = vector.load %arg3[%c0_1, %c0_2] : memref<128x128xbf16, #tpu.memory_space<vmem>>, vector<128x128xbf16>
    %cst = arith.constant dense<0.000000e+00> : vector<8x128xf32>
    %2 = tpu.matmul %0, %1, %cst {dimension_numbers = #tpu.dot_dimension_numbers<[1], [0], [0], [1], [0, 0, 1, 1], [], []>} : vector<8x128xbf16>, vector<128x128xbf16>, vector<8x128xf32> -> vector<8x128xf32>
    %c0_3 = arith.constant 0 : index
    %c0_4 = arith.constant 0 : index
    %3 = vector.load %arg2[%c0_3, %c0_4] : memref<8x1xf32, #tpu.memory_space<vmem>>, vector<8x1xf32>
    %4 = vector.broadcast %3 : vector<8x1xf32> to vector<8x128xf32>
    %5 = arith.addf %2, %4 : vector<8x128xf32>
    %6 = arith.negf %5 : vector<8x128xf32>
    %7 = math.exp %6 : vector<8x128xf32>
    %cst_5 = arith.constant 1.000000e+00 : f32
    %8 = vector.broadcast %cst_5 : f32 to vector<8x128xf32>
    %9 = arith.addf %8, %7 : vector<8x128xf32>
    %10 = arith.divf %8, %9 : vector<8x128xf32>
    %c0_6 = arith.constant 0 : index
    %c0_7 = arith.constant 0 : index
    %11 = vector.load %arg4[%c0_6, %c0_7] : memref<8x128xf32, #tpu.memory_space<vmem>>, vector<8x128xf32>
    tpu.vector_store %arg4[%c0_6, %c0_7], %10 {strides = array<i32>} : memref<8x128xf32, #tpu.memory_space<vmem>>, vector<8x128xf32>,
    return
  }
  func.func @transform_0(%arg0: i32) -> (i32, i32) {
    %c0_i32 = arith.constant 0 : i32
    %c0_i32_0 = arith.constant 0 : i32
    %c0_i32_1 = arith.constant 0 : i32
    return %c0_i32, %c0_i32_0 : i32, i32
  }
  func.func @transform_1(%arg0: i32) -> (i32, i32) {
    %c0_i32 = arith.constant 0 : i32
    %c0_i32_0 = arith.constant 0 : i32
    %c0_i32_1 = arith.constant 0 : i32
    return %c0_i32, %c0_i32_0 : i32, i32
  }
  func.func @transform_2(%arg0: i32) -> (i32, i32) {
    %c0_i32 = arith.constant 0 : i32
    %c0_i32_0 = arith.constant 0 : i32
    return %c0_i32, %arg0 : i32, i32
  }
  func.func @transform_3(%arg0: i32) -> (i32, i32) {
    %c0_i32 = arith.constant 0 : i32
    %c0_i32_0 = arith.constant 0 : i32
    return %c0_i32, %arg0 : i32, i32
  }
}

</mosaic_0001>

<bundles_post_ra>
// kernel: qmult_forward_head_batch.1
= control target key start
LH: loop header
LB: loop body
LE: loop exit
PB: predicated region body
PF: predicated region fallthrough
CT: control target
= control target key end

     0   :  { %v225_v1 = vmov 0.0   ;;  %vm226_vm0 = vmmov 0   ;;  %v227_v3 = vmov 0   ;;  %s282_s0 = inlined_call_operand.vmem [shape: bf16[8,128], index: 0, kind: input, shape index: {}]   ;;  %s283_s1 = inlined_call_operand.vmem [shape: f32[8,1], index: 1, kind: input, shape index: {}]   ;;  %s284_s2 = inlined_call_operand.vmem [shape: bf16[128,128], index: 2, kind: input, shape index: {}]   ;;  %s285_s3 = inlined_call_operand.hbm [shape: f32[8,128], index: 3, kind: output, shape index: {}]  }
   0x1   :  { %v191_v0 = vld [vmem:[%s284_s2 + $0x38] sm:$0xff]   ;;  %166 = vmatprep.subr.bf16.mxu0 %v225_v1  ;;  %v192_v2 = vld [vmem:[%s284_s2 + $0x30] sm:$0xff]   ;;  %182 = vmatprep.mubr.msk.bf16.mxu0 %vm226_vm0, %v225_v1  ;;  %v193_v4 = vld [vmem:[%s284_s2 + $0x28] sm:$0xff]  }
   0x2   :  { %167 = vmatpush3.bf16.msra.mxu0 %v191_v0  ;;  %190 = vset.pattern.permute.xlu0 %v227_v3  ;;  %v33_v5 = vld [vmem:[%s283_s1] sm:$0xff] }
   0x3   :  { %168 = vmatprep.subr.bf16.mxu0 %v225_v1 }
   0x6   :  { %169 = vmatpush3.bf16.msra.mxu0 %v192_v2 }
   0x7   :  { %170 = vmatprep.subr.bf16.mxu0 %v225_v1 }
   0x8   :  { %8 = vsyncpa [#allocation3], 0  ;;  %36 = vperm.xlu0 %190, %v33_v5   ;;  %v194_v6 = vld [vmem:[%s284_s2 + $0x20] sm:$0xff]   ;;  %v195_v7 = vld [vmem:[%s284_s2 + $0x18] sm:$0xff]   ;;  %s228_s4 = smov [#allocation2]  }
   0x9   :  { %v196_v8 = vld [vmem:[%s284_s2 + $0x10] sm:$0xff]   ;;  %v197_v9 = vld [vmem:[%s284_s2 + $0x8] sm:$0xff]   ;;  %v198_v10 = vld [vmem:[%s284_s2] sm:$0xff]   ;;  %s140_s2 = sshll.u32 %s228_s4, 4  ;;  %s141_s2 = int_to_ptr.vmem [resolvable:$true] %s140_s2 }
   0xa   :  { %171 = vmatpush3.bf16.msra.mxu0 %v193_v4  ;;  %v16_v11 = vld [vmem:[%s282_s0] sm:$0xf]  ;;  %s203_s5 = scalar_lea.vmem %s141_s2, 128  ;;  %p208_p1 = scmp.lt.s32.totalorder %s141_s2, %s141_s2 }
   0xb   :  { %172 = vmatprep.subr.bf16.mxu0 %v225_v1  ;;  %p204_p0 = scmp.ne.s32.totalorder %s141_s2, %s203_s5  ;;  %p209_p2 = scmp.lt.s32.totalorder %s203_s5, %s203_s5 }
   0xd   :  { %p210_p3 = por %p209_p2, %p208_p1 }
   0xe   :  { %173 = vmatpush3.bf16.msra.mxu0 %v194_v6 }
   0xf   :  { %174 = vmatprep.subr.bf16.mxu0 %v225_v1  ;;  %p211_p4 = pnand %p210_p3, %p204_p0 }
  0x12   :  { %175 = vmatpush3.bf16.msra.mxu0 %v195_v7 }
  0x13   :  { %176 = vmatprep.subr.bf16.mxu0 %v225_v1 }
  0x16   :  { %177 = vmatpush3.bf16.msra.mxu0 %v196_v8 }
  0x17   :  { %178 = vmatprep.subr.bf16.mxu0 %v225_v1 }
  0x1a   :  { %179 = vmatpush3.bf16.msra.mxu0 %v197_v9 }
  0x1b   :  { %180 = vmatprep.subr.bf16.mxu0 %v225_v1 }
  0x1e   :  { %181 = vmatpush3.bf16.msra.mxu0 %v198_v10 }
  0x21   :  { %183 = vmatmul.mubr.bf16.vlgmr.msra.gmra.mxu0 %v16_v11 }
  0x83   :  { %v37_v12 = vpop.permute.xlu0 %36 }
  0xe1   :  { %v121_v13 = vpop.f32.mrf.mxu0 }
  0xe2   :  { %v122_v14 = vadd.f32 %v121_v13, %v37_v12 }
  0xe3   :  { %v184_v15 = vpop.f32.mrf.mxu0 }
  0xe4   :  { %v156_v16 = vmul.f32 -1.442695, %v122_v14 }
  0xe5   :  { %v124_v17 = vpop.f32.mrf.mxu0 }
  0xe6   :  { %199 = vpow2.f32 %v156_v16 }
  0xe7   :  { %v185_v18 = vpop.f32.mrf.mxu0 }
  0xf3   :  { %v200_v19 = vpop.eup %199 }
  0xf4   :  { %v130_v20 = vadd.f32 1.0, %v200_v19 }
  0xf6   :  { %201 = vrcp.f32 %v130_v20 }
 0x103   :  { %v202_v21 = vpop.eup %201 }
 0x104   :  { %133 = vst [vmem:[#allocation2] sm:$0xff] %v202_v21 }
 0x105   :  { %214 = shalt.err (!%p211_p4)
}
 0x106   :  { %143 = dma.vmem_to_hbm [thread:$0]  %s141_s2, 128, %s285_s3, [#allocation3]  }
 0x107   :  { %223 = dma.done.wait [#allocation3], 128  }
 0x108   :  { %224 = vsyncadd [#allocation3], 4294967168 }
 0x109   :  { %147 = vsyncpa [#allocation3], 1 }

</bundles_post_ra>
